<compile_context>
chip_gen: v7x
topology: tpu7x:2x2x1
jax: 0.10.0
libtpu: 0.0.40
codegen_flags: <defaults>
</compile_context>

<pallas_src>
import numpy as np
import jax
import jax.numpy as jnp
from jax.experimental import pallas as pl
from jax.experimental.pallas import tpu as pltpu  # noqa: F401  (no TPU-specific params needed)

# ---------------- configuration (DeCBR(inplanes=4, planes=8, kernel=2, stride=2)) --------
N, C_IN, H_IN, W_IN = 2, 4, 8, 8
C_OUT, K, STRIDE, PAD = 8, 2, 2, 0
KK = K * K
H_OUT = (H_IN - 1) * STRIDE - 2 * PAD + K      # 16
W_OUT = (W_IN - 1) * STRIDE - 2 * PAD + K      # 16
HW_IN = H_IN * W_IN                            # 64
HW_OUT = H_OUT * W_OUT                         # 256  -> lane-dense minor dim (2 x 128)
EPS = 1e-5                                     # PyTorch BatchNorm2d default

# The in-kernel pixel shuffle (deconv taps -> interleaved NCHW columns) is exact only
# for stride == kernel and padding == 0; fail loudly if the config changes.
assert STRIDE == K and PAD == 0, "DeCBR kernel requires stride == kernel and padding == 0"


def _interleave_constants():
    """Compile-time one-hot matrices mapping (input pixel, tap) -> output column.

    For output column col = h_out*W_OUT + w_out with h_out = i*K + ki, w_out = j*K + kj:
      S[i*W_IN + j, col] = 1   (spread each input pixel to its K*K output columns)
      P[ki*K + kj,  col] = 1   (tile each tap's weight across its output columns)
    """
    S = np.zeros((HW_IN, HW_OUT), np.float32)
    P = np.zeros((KK, HW_OUT), np.float32)
    for col in range(HW_OUT):
        h, w = divmod(col, W_OUT)
        i, ki = divmod(h, K)
        j, kj = divmod(w, K)
        S[i * W_IN + j, col] = 1.0
        P[ki * K + kj, col] = 1.0
    return jnp.asarray(S), jnp.asarray(P)


_S_CONST, _P_CONST = _interleave_constants()


def decbr_kernel(x_ref, w_ref, g_ref, b_ref, s_ref, p_ref, o_ref):
    # x_ref: (N*C_IN, HW_IN)   = (8, 64)    rows = (n, ci), cols = (i, j)   [bitcast of NCHW]
    # w_ref: (C_IN*C_OUT, KK)  = (32, 4)    rows = (ci, co), cols = tap (ki, kj)
    # g_ref, b_ref: (C_OUT, 1) = (8, 1)     gamma / beta
    # s_ref: (HW_IN, HW_OUT)   = (64, 256)  one-hot pixel -> output-column spread (constant)
    # p_ref: (KK, HW_OUT)      = (4, 256)   one-hot tap   -> output-column spread (constant)
    # o_ref: (N*C_OUT, HW_OUT) = (16, 256)  rows = (n, co), cols = (h_out, w_out)  [NCHW order]

    # --- spread activations & weights into the interleaved output-column layout (MXU) ---
    xs = jnp.dot(x_ref[...], s_ref[...], preferred_element_type=jnp.float32)   # (8, 256)
    wp = jnp.dot(w_ref[...], p_ref[...], preferred_element_type=jnp.float32)   # (32, 256)

    # --- transposed conv: contraction over C_IN = 4 as unrolled VPU FMAs per batch ---
    # TODO(synk): switch this contraction to a single MXU dot if C_IN grows large (>=32).
    acc = []
    for n in range(N):
        a = xs[n * C_IN:n * C_IN + 1, :] * wp[0:C_OUT, :]                       # (C_OUT, 256)
        for ci in range(1, C_IN):
            a = a + xs[n * C_IN + ci:n * C_IN + ci + 1, :] * wp[ci * C_OUT:(ci + 1) * C_OUT, :]
        acc.append(a)

    # --- BatchNorm2d (training-mode biased batch stats over N, H, W), two-pass ---
    inv_cnt = jnp.float32(1.0 / (N * HW_OUT))                                   # 1 / (N*H_OUT*W_OUT)
    ch_sum = jnp.sum(acc[0], axis=1, keepdims=True)
    for n in range(1, N):
        ch_sum = ch_sum + jnp.sum(acc[n], axis=1, keepdims=True)
    mean = ch_sum * inv_cnt                                                     # (C_OUT, 1)
    mean_b = jnp.broadcast_to(mean, (C_OUT, HW_OUT))                            # hoisted

    dev = [acc[n] - mean_b for n in range(N)]                                   # per-block, no y^2 temp
    ch_sq = jnp.sum(dev[0] * dev[0], axis=1, keepdims=True)
    for n in range(1, N):
        ch_sq = ch_sq + jnp.sum(dev[n] * dev[n], axis=1, keepdims=True)
    var = ch_sq * inv_cnt                                                       # (C_OUT, 1), >= 0 by construction

    scale = g_ref[...] * jax.lax.rsqrt(var + EPS)                               # (C_OUT, 1)
    scale_b = jnp.broadcast_to(scale, (C_OUT, HW_OUT))                          # hoisted
    beta_b = jnp.broadcast_to(b_ref[...], (C_OUT, HW_OUT))                      # hoisted

    # --- affine + ReLU; full-width unmasked f32 stores in final NCHW column order ---
    for n in range(N):
        o_ref[n * C_OUT:(n + 1) * C_OUT, :] = jnp.maximum(dev[n] * scale_b + beta_b, 0.0)


@jax.jit
def decbr_forward(x_nchw, weight, gamma, beta):
    """x_nchw: (N, C_IN, H_IN, W_IN); weight: (C_IN, C_OUT, K, K) -> (N, C_OUT, H_OUT, W_OUT)."""
    # Wrapper glue is bitcast reshapes only (no transposes, no broadcasts, no gathers).
    x2 = x_nchw.reshape(N * C_IN, HW_IN).astype(jnp.float32)
    w2 = weight.reshape(C_IN * C_OUT, KK).astype(jnp.float32)
    g2 = gamma.reshape(C_OUT, 1).astype(jnp.float32)
    b2 = beta.reshape(C_OUT, 1).astype(jnp.float32)

    out2 = pl.pallas_call(
        decbr_kernel,
        out_shape=jax.ShapeDtypeStruct((N * C_OUT, HW_OUT), jnp.float32),
        # single block, no grid: whole problem (~100 KiB incl. constants) lives in VMEM,
        # no pipeline buffers, no per-step overhead.
    )(x2, w2, g2, b2, _S_CONST, _P_CONST)

    # Rows are (n, co) and columns are (h_out, w_out): already NCHW memory order.
    return out2.reshape(N, C_OUT, H_OUT, W_OUT)


def decbr_reference(x_nchw, weight, gamma, beta):
    """Pure-JAX reference mirroring PyTorch DeCBR.forward (training-mode BN)."""
    # deconv (stride == kernel, pad == 0): out[n, co, i*S+ki, j*S+kj] = sum_ci x[n,ci,i,j] * W[ci,co,ki,kj]
    t = jnp.einsum("ncij,cokl->noikjl", x_nchw, weight)                # (N, Co, Hin, K, Win, K)
    y = t.reshape(N, C_OUT, H_OUT, W_OUT)
    mean = jnp.mean(y, axis=(0, 2, 3), keepdims=True)
    var = jnp.mean((y - mean) ** 2, axis=(0, 2, 3), keepdims=True)     # biased
    yhat = (y - mean) * jax.lax.rsqrt(var + EPS)
    yhat = yhat * gamma.reshape(1, C_OUT, 1, 1) + beta.reshape(1, C_OUT, 1, 1)
    return jnp.maximum(yhat, 0.0)


if __name__ == "__main__":
    key = jax.random.PRNGKey(0)
    kx, kw = jax.random.split(key)
    x = jax.random.normal(kx, (N, C_IN, H_IN, W_IN), dtype=jnp.float32)
    # PyTorch ConvTranspose2d weight shape: (in_channels, out_channels, kH, kW)
    weight = jax.random.normal(kw, (C_IN, C_OUT, K, K), dtype=jnp.float32) * 0.1
    gamma = 1.0 + 0.1 * jnp.arange(C_OUT, dtype=jnp.float32)
    beta = 0.05 * jnp.arange(C_OUT, dtype=jnp.float32) - 0.1

    out = jax.block_until_ready(decbr_forward(x, weight, gamma, beta))
    ref = jax.block_until_ready(decbr_reference(x, weight, gamma, beta))

    assert out.shape == (N, C_OUT, H_OUT, W_OUT), out.shape
    assert jnp.max(jnp.abs(out - ref)) < 1e-4, float(jnp.max(jnp.abs(out - ref)))
    print("KERNEL_OK")
</pallas_src>

<mosaic_0001>
module attributes {stable_mosaic.version = 11 : i64} {
  func.func @decbr_kernel(%arg0: memref<8x64xf32, #tpu.memory_space<vmem>>, %arg1: memref<32x4xf32, #tpu.memory_space<vmem>>, %arg2: memref<8x1xf32, #tpu.memory_space<vmem>>, %arg3: memref<8x1xf32, #tpu.memory_space<vmem>>, %arg4: memref<64x256xf32, #tpu.memory_space<vmem>>, %arg5: memref<4x256xf32, #tpu.memory_space<vmem>>, %arg6: memref<16x256xf32, #tpu.memory_space<vmem>>) attributes {dimension_semantics = [], scalar_prefetch = 0 : i64, scratch_operands = 0 : i64, tpu.core_type = #tpu.core_type<tc>} {
    %c0 = arith.constant 0 : index
    %c0_0 = arith.constant 0 : index
    %0 = vector.load %arg0[%c0, %c0_0] : memref<8x64xf32, #tpu.memory_space<vmem>>, vector<8x64xf32>
    %c0_1 = arith.constant 0 : index
    %c0_2 = arith.constant 0 : index
    %1 = vector.load %arg4[%c0_1, %c0_2] : memref<64x256xf32, #tpu.memory_space<vmem>>, vector<64x256xf32>
    %cst = arith.constant dense<0.000000e+00> : vector<8x256xf32>
    %2 = tpu.matmul %0, %1, %cst {dimension_numbers = #tpu.dot_dimension_numbers<[1], [0], [0], [1], [0, 0, 1, 1], [], []>} : vector<8x64xf32>, vector<64x256xf32>, vector<8x256xf32> -> vector<8x256xf32>
    %c0_3 = arith.constant 0 : index
    %c0_4 = arith.constant 0 : index
    %3 = vector.load %arg1[%c0_3, %c0_4] : memref<32x4xf32, #tpu.memory_space<vmem>>, vector<32x4xf32>
    %c0_5 = arith.constant 0 : index
    %c0_6 = arith.constant 0 : index
    %4 = vector.load %arg5[%c0_5, %c0_6] : memref<4x256xf32, #tpu.memory_space<vmem>>, vector<4x256xf32>
    %cst_7 = arith.constant dense<0.000000e+00> : vector<32x256xf32>
    %5 = tpu.matmul %3, %4, %cst_7 {dimension_numbers = #tpu.dot_dimension_numbers<[1], [0], [0], [1], [0, 0, 1, 1], [], []>} : vector<32x4xf32>, vector<4x256xf32>, vector<32x256xf32> -> vector<32x256xf32>
    %6 = vector.extract_strided_slice %2 {offsets = [0, 0], sizes = [1, 256], strides = [1, 1]} : vector<8x256xf32> to vector<1x256xf32>
    %7 = vector.extract_strided_slice %5 {offsets = [0, 0], sizes = [8, 256], strides = [1, 1]} : vector<32x256xf32> to vector<8x256xf32>
    %8 = vector.broadcast %6 : vector<1x256xf32> to vector<8x256xf32>
    %9 = arith.mulf %8, %7 : vector<8x256xf32>
    %10 = vector.extract_strided_slice %2 {offsets = [1, 0], sizes = [1, 256], strides = [1, 1]} : vector<8x256xf32> to vector<1x256xf32>
    %11 = vector.extract_strided_slice %5 {offsets = [8, 0], sizes = [8, 256], strides = [1, 1]} : vector<32x256xf32> to vector<8x256xf32>
    %12 = vector.broadcast %10 : vector<1x256xf32> to vector<8x256xf32>
    %13 = arith.mulf %12, %11 : vector<8x256xf32>
    %14 = arith.addf %9, %13 : vector<8x256xf32>
    %15 = vector.extract_strided_slice %2 {offsets = [2, 0], sizes = [1, 256], strides = [1, 1]} : vector<8x256xf32> to vector<1x256xf32>
    %16 = vector.extract_strided_slice %5 {offsets = [16, 0], sizes = [8, 256], strides = [1, 1]} : vector<32x256xf32> to vector<8x256xf32>
    %17 = vector.broadcast %15 : vector<1x256xf32> to vector<8x256xf32>
    %18 = arith.mulf %17, %16 : vector<8x256xf32>
    %19 = arith.addf %14, %18 : vector<8x256xf32>
    %20 = vector.extract_strided_slice %2 {offsets = [3, 0], sizes = [1, 256], strides = [1, 1]} : vector<8x256xf32> to vector<1x256xf32>
    %21 = vector.extract_strided_slice %5 {offsets = [24, 0], sizes = [8, 256], strides = [1, 1]} : vector<32x256xf32> to vector<8x256xf32>
    %22 = vector.broadcast %20 : vector<1x256xf32> to vector<8x256xf32>
    %23 = arith.mulf %22, %21 : vector<8x256xf32>
    %24 = arith.addf %19, %23 : vector<8x256xf32>
    %25 = vector.extract_strided_slice %2 {offsets = [4, 0], sizes = [1, 256], strides = [1, 1]} : vector<8x256xf32> to vector<1x256xf32>
    %26 = vector.extract_strided_slice %5 {offsets = [0, 0], sizes = [8, 256], strides = [1, 1]} : vector<32x256xf32> to vector<8x256xf32>
    %27 = vector.broadcast %25 : vector<1x256xf32> to vector<8x256xf32>
    %28 = arith.mulf %27, %26 : vector<8x256xf32>
    %29 = vector.extract_strided_slice %2 {offsets = [5, 0], sizes = [1, 256], strides = [1, 1]} : vector<8x256xf32> to vector<1x256xf32>
    %30 = vector.extract_strided_slice %5 {offsets = [8, 0], sizes = [8, 256], strides = [1, 1]} : vector<32x256xf32> to vector<8x256xf32>
    %31 = vector.broadcast %29 : vector<1x256xf32> to vector<8x256xf32>
    %32 = arith.mulf %31, %30 : vector<8x256xf32>
    %33 = arith.addf %28, %32 : vector<8x256xf32>
    %34 = vector.extract_strided_slice %2 {offsets = [6, 0], sizes = [1, 256], strides = [1, 1]} : vector<8x256xf32> to vector<1x256xf32>
    %35 = vector.extract_strided_slice %5 {offsets = [16, 0], sizes = [8, 256], strides = [1, 1]} : vector<32x256xf32> to vector<8x256xf32>
    %36 = vector.broadcast %34 : vector<1x256xf32> to vector<8x256xf32>
    %37 = arith.mulf %36, %35 : vector<8x256xf32>
    %38 = arith.addf %33, %37 : vector<8x256xf32>
    %39 = vector.extract_strided_slice %2 {offsets = [7, 0], sizes = [1, 256], strides = [1, 1]} : vector<8x256xf32> to vector<1x256xf32>
    %40 = vector.extract_strided_slice %5 {offsets = [24, 0], sizes = [8, 256], strides = [1, 1]} : vector<32x256xf32> to vector<8x256xf32>
    %41 = vector.broadcast %39 : vector<1x256xf32> to vector<8x256xf32>
    %42 = arith.mulf %41, %40 : vector<8x256xf32>
    %43 = arith.addf %38, %42 : vector<8x256xf32>
    %cst_8 = arith.constant dense<0.000000e+00> : vector<8xf32>
    %44 = vector.multi_reduction <add>, %24, %cst_8 [1] : vector<8x256xf32> to vector<8xf32>
    %45 = vector.shape_cast %44 : vector<8xf32> to vector<8x1xf32>
    %cst_9 = arith.constant dense<0.000000e+00> : vector<8xf32>
    %46 = vector.multi_reduction <add>, %43, %cst_9 [1] : vector<8x256xf32> to vector<8xf32>
    %47 = vector.shape_cast %46 : vector<8xf32> to vector<8x1xf32>
    %48 = arith.addf %45, %47 : vector<8x1xf32>
    %cst_10 = arith.constant 0.001953125 : f32
    %49 = vector.broadcast %cst_10 : f32 to vector<8x1xf32>
    %50 = arith.mulf %48, %49 : vector<8x1xf32>
    %51 = vector.shape_cast %50 : vector<8x1xf32> to vector<8x1xf32>
    %52 = vector.broadcast %51 : vector<8x1xf32> to vector<8x256xf32>
    %53 = arith.subf %24, %52 : vector<8x256xf32>
    %54 = arith.subf %43, %52 : vector<8x256xf32>
    %55 = arith.mulf %53, %53 : vector<8x256xf32>
    %cst_11 = arith.constant dense<0.000000e+00> : vector<8xf32>
    %56 = vector.multi_reduction <add>, %55, %cst_11 [1] : vector<8x256xf32> to vector<8xf32>
    %57 = vector.shape_cast %56 : vector<8xf32> to vector<8x1xf32>
    %58 = arith.mulf %54, %54 : vector<8x256xf32>
    %cst_12 = arith.constant dense<0.000000e+00> : vector<8xf32>
    %59 = vector.multi_reduction <add>, %58, %cst_12 [1] : vector<8x256xf32> to vector<8xf32>
    %60 = vector.shape_cast %59 : vector<8xf32> to vector<8x1xf32>
    %61 = arith.addf %57, %60 : vector<8x1xf32>
    %cst_13 = arith.constant 0.001953125 : f32
    %62 = vector.broadcast %cst_13 : f32 to vector<8x1xf32>
    %63 = arith.mulf %61, %62 : vector<8x1xf32>
    %c0_14 = arith.constant 0 : index
    %c0_15 = arith.constant 0 : index
    %64 = vector.load %arg2[%c0_14, %c0_15] : memref<8x1xf32, #tpu.memory_space<vmem>>, vector<8x1xf32>
    %cst_16 = arith.constant 9.99999974E-6 : f32
    %65 = vector.broadcast %cst_16 : f32 to vector<8x1xf32>
    %66 = arith.addf %63, %65 : vector<8x1xf32>
    %67 = math.rsqrt %66 : vector<8x1xf32>
    %68 = arith.mulf %64, %67 : vector<8x1xf32>
    %69 = vector.shape_cast %68 : vector<8x1xf32> to vector<8x1xf32>
    %70 = vector.broadcast %69 : vector<8x1xf32> to vector<8x256xf32>
    %c0_17 = arith.constant 0 : index
    %c0_18 = arith.constant 0 : index
    %71 = vector.load %arg3[%c0_17, %c0_18] : memref<8x1xf32, #tpu.memory_space<vmem>>, vector<8x1xf32>
    %72 = vector.shape_cast %71 : vector<8x1xf32> to vector<8x1xf32>
    %73 = vector.broadcast %72 : vector<8x1xf32> to vector<8x256xf32>
    %74 = arith.mulf %53, %70 : vector<8x256xf32>
    %75 = arith.addf %74, %73 : vector<8x256xf32>
    %cst_19 = arith.constant 0.000000e+00 : f32
    %76 = vector.broadcast %cst_19 : f32 to vector<8x256xf32>
    %77 = arith.maximumf %75, %76 : vector<8x256xf32>
    %c0_20 = arith.constant 0 : index
    %c0_21 = arith.constant 0 : index
    %78 = vector.load %arg6[%c0_20, %c0_21] : memref<16x256xf32, #tpu.memory_space<vmem>>, vector<8x256xf32>
    tpu.vector_store %arg6[%c0_20, %c0_21], %77 {strides = array<i32>} : memref<16x256xf32, #tpu.memory_space<vmem>>, vector<8x256xf32>,
    %79 = arith.mulf %54, %70 : vector<8x256xf32>
    %80 = arith.addf %79, %73 : vector<8x256xf32>
    %cst_22 = arith.constant 0.000000e+00 : f32
    %81 = vector.broadcast %cst_22 : f32 to vector<8x256xf32>
    %82 = arith.maximumf %80, %81 : vector<8x256xf32>
    %c8 = arith.constant 8 : index
    %c0_23 = arith.constant 0 : index
    %83 = vector.load %arg6[%c8, %c0_23] : memref<16x256xf32, #tpu.memory_space<vmem>>, vector<8x256xf32>
    tpu.vector_store %arg6[%c8, %c0_23], %82 {strides = array<i32>} : memref<16x256xf32, #tpu.memory_space<vmem>>, vector<8x256xf32>,
    return
  }
}

</mosaic_0001>

<bundles_post_ra>
// kernel: decbr_forward.1
= control target key start
LH: loop header
LB: loop body
LE: loop exit
PB: predicated region body
PF: predicated region fallthrough
CT: control target
= control target key end

     0   :  { %v410_v3 = vmov 0.0   ;;  %vm135_vm0 = vcmask 1043456   ;;  %vm122_vm1 = vcmask 31744   ;;  %vm40_vm2 = vcmask 523264   ;;  %s537_s4 = inlined_call_operand.vmem [shape: f32[64,256], index: 4, kind: input, shape index: {}]   ;;  %s538_s5 = inlined_call_operand.vmem [shape: f32[4,256], index: 5, kind: input, shape index: {}]   ;;  %s539_s1 = inlined_call_operand.vmem [shape: f32[32,4], index: 1, kind: input, shape index: {}]   ;;  %s540_s0 = inlined_call_operand.vmem [shape: f32[8,64], index: 0, kind: input, shape index: {}]   ;;  %s541_s3 = inlined_call_operand.vmem [shape: f32[8,1], index: 3, kind: input, shape index: {}]   ;;  %s542_s2 = inlined_call_operand.vmem [shape: f32[8,1], index: 2, kind: input, shape index: {}]   ;;  %s543_s6 = inlined_call_operand.vmem [shape: f32[16,256], index: 6, kind: output, shape index: {}]  }
   0x1   :  { %v25_v0 = vld [vmem:[%s537_s4 + $0x8] sm:$0xff]  ;;  %v27_v1 = vld [vmem:[%s537_s4 + $0x18] sm:$0xff]  ;;  %v24_v2 = vld [vmem:[%s537_s4] sm:$0xff]  ;;  %204 = vmatprep.mubr.f32.mxu1 %v410_v3  ;;  %108 = vmatprep.mubr.f32.mxu0 %v410_v3  ;;  %v229_v34 = vlaneseq }
   0x2   :  { %v387_v4 = vpack.c.bf16 %v27_v1, %v25_v0  ;;  %v26_v5 = vld [vmem:[%s537_s4 + $0x10] sm:$0xff]  ;;  %v29_v6 = vld [vmem:[%s537_s4 + $0x28] sm:$0xff]  ;;  %v31_v7 = vld [vmem:[%s537_s4 + $0x38] sm:$0xff] }
   0x3   :  { %v389_v8 = vpack.c.bf16 %v26_v5, %v24_v2  ;;  %v391_v9 = vpack.c.bf16 %v31_v7, %v29_v6  ;;  %v119_v10 = vld [vmem:[%s538_s5] sm:$0xff]  ;;  %v30_v12 = vld [vmem:[%s537_s4 + $0x30] sm:$0xff]  ;;  %v33_v14 = vld [vmem:[%s537_s4 + $0x48] sm:$0xff]  ;;  %v230_v37 = vshrl.u32 %v229_v34, 7 }
   0x4   :  { %v28_v11 = vld [vmem:[%s537_s4 + $0x20] sm:$0xff]  ;;  %388 = vmatprep.subr.bf16.mxu0 %v387_v4  ;;  %v121_v13 = vcombine.high %v119_v10, %v119_v10  ;;  %v35_v15 = vld [vmem:[%s537_s4 + $0x58] sm:$0xff]  ;;  %v34_v20 = vld [vmem:[%s537_s4 + $0x50] sm:$0xff] }
   0x5   :  { %390 = vmatpush1.bf16.msra.mxu0 %v389_v8  ;;  %v393_v16 = vpack.c.bf16 %v30_v12, %v28_v11  ;;  %v115_v17 = vld [vmem:[%s539_s1] sm:$0xff]  ;;  %v395_v18 = vpack.c.bf16 %v35_v15, %v33_v14  ;;  %v37_v21 = vld [vmem:[%s537_s4 + $0x68] sm:$0xff]  ;;  %v39_v22 = vld [vmem:[%s537_s4 + $0x78] sm:$0xff]  ;;  %v231_v39 = vsub.s32 0, %v230_v37  ;;  %v241_v40 = vsub.s32 1, %v230_v37 }
   0x6   :  { %392 = vmatprep.subr.bf16.mxu0 %v391_v9  ;;  %381 = vmatprep.subr.msk.mxu1 %vm135_vm0, %v121_v13  ;;  %v32_v19 = vld [vmem:[%s537_s4 + $0x40] sm:$0xff]  ;;  %v116_v24 = vld [vmem:[%s539_s1 + $0x8] sm:$0xff]  ;;  %v399_v25 = vpack.c.bf16 %v39_v22, %v37_v21  ;;  %v38_v27 = vld [vmem:[%s537_s4 + $0x70] sm:$0xff]  ;;  %v253_v41 = vsub.s32 2, %v230_v37  ;;  %v277_v42 = vsub.s32 4, %v230_v37  ;;  %v287_v44 = vsub.s32 5, %v230_v37 }
   0x7   :  { %382 = vmatpush1.msk.msra.mxu1 %vm135_vm0, %v119_v10  ;;  %v397_v23 = vpack.c.bf16 %v34_v20, %v32_v19  ;;  %v36_v26 = vld [vmem:[%s537_s4 + $0x60] sm:$0xff]  ;;  %v117_v29 = vld [vmem:[%s539_s1 + $0x10] sm:$0xff]  ;;  %v118_v31 = vld [vmem:[%s539_s1 + $0x18] sm:$0xff]  ;;  %v299_v45 = vsub.s32 6, %v230_v37  ;;  %v265_v48 = vsub.s32 3, %v230_v37  ;;  %v311_v49 = vsub.s32 7, %v230_v37 }
   0x8   :  { %383 = vmatmul.mubr.msk.f32.vlgmr.msra.gmra.mrb[0].mxu1 %vm122_vm1, %v115_v17  ;;  %v401_v28 = vpack.c.bf16 %v38_v27, %v36_v26  ;;  %v23_v30 = vld [vmem:[%s540_s0] sm:$0xff] }
   0x9   :  { %394 = vmatpush1.bf16.msra.mxu0 %v393_v16  ;;  %210 = vmatprep.mubr.f32.mxu1 %v410_v3 }
   0xa   :  { %396 = vmatprep.subr.bf16.mxu0 %v395_v18 }
   0xc   :  { %384 = vmatmul.mubr.msk.f32.gmra.mrb[2].mxu1 %vm122_vm1, %v116_v24 }
   0xd   :  { %398 = vmatpush1.bf16.msra.mxu0 %v397_v23  ;;  %216 = vmatprep.mubr.f32.mxu1 %v410_v3 }
   0xe   :  { %400 = vmatprep.subr.bf16.mxu0 %v399_v25 }
  0x10   :  { %385 = vmatmul.mubr.msk.f32.gmra.mrb[4].mxu1 %vm122_vm1, %v117_v29 }
  0x11   :  { %402 = vmatpush1.bf16.msra.mxu0 %v401_v28  ;;  %222 = vmatprep.mubr.f32.mxu1 %v410_v3 }
  0x14   :  { %380 = vmatmul.mubr.msk.f32.vlgmr.msra.gmra.mrb[0].mxu0 %vm40_vm2, %v23_v30  ;;  %386 = vmatmul.mubr.msk.f32.gmra.mrb[6].mxu1 %vm122_vm1, %v118_v31 }
  0xdb   :  { %v206_v32 = vpop.f32.mrb[0].mxu1 }
  0xdc   :  { %v208_v33 = vpop.f32.mrb[1].mxu1 }
  0xdf   :  { %v212_v35 = vpop.f32.mrb[2].mxu1 }
  0xe0   :  { %v214_v36 = vpop.f32.mrb[3].mxu1 }
  0xe3   :  { %v218_v38 = vpop.f32.mrb[4].mxu1 }
  0xe4   :  { %v220_v43 = vpop.f32.mrb[5].mxu1 }
  0xe7   :  { %v110_v46 = vpop.f32.mrb[0].mxu0  ;;  %v224_v47 = vpop.f32.mrb[6].mxu1 }
  0xe8   :  { %v232_v50 = vrot.slane %v110_v46, %v231_v39  ;;  %v242_v51 = vrot.slane %v110_v46, %v241_v40  ;;  %v254_v52 = vrot.slane %v110_v46, %v253_v41  ;;  %v278_v53 = vrot.slane %v110_v46, %v277_v42  ;;  %v112_v54 = vpop.f32.mrb[1].mxu0  ;;  %v226_v55 = vpop.f32.mrb[7].mxu1 }
  0xe9   :  { %v288_v56 = vrot.slane %v110_v46, %v287_v44  ;;  %v300_v57 = vrot.slane %v110_v46, %v299_v45  ;;  %v236_v58 = vrot.slane %v112_v54, %v231_v39  ;;  %v246_v59 = vrot.slane %v112_v54, %v241_v40 }
  0xea   :  { %v237_v60 = vmul.f32 %v232_v50, %v206_v32  ;;  %v247_v61 = vmul.f32 %v242_v51, %v212_v35  ;;  %v259_v62 = vmul.f32 %v254_v52, %v218_v38  ;;  %v283_v63 = vmul.f32 %v278_v53, %v206_v32 }
  0xeb   :  { %v293_v0 = vmul.f32 %v288_v56, %v212_v35  ;;  %v305_v1 = vmul.f32 %v300_v57, %v218_v38  ;;  %v238_v2 = vmul.f32 %v236_v58, %v208_v33  ;;  %v248_v3 = vmul.f32 %v246_v59, %v214_v36 }
  0xec   :  { %v249_v4 = vadd.f32 %v247_v61, %v237_v60  ;;  %v258_v5 = vrot.slane %v112_v54, %v253_v41  ;;  %v282_v6 = vrot.slane %v112_v54, %v277_v42  ;;  %v292_v7 = vrot.slane %v112_v54, %v287_v44 }
  0xed   :  { %v295_v8 = vadd.f32 %v293_v0, %v283_v63  ;;  %v250_v9 = vadd.f32 %v248_v3, %v238_v2  ;;  %v304_v10 = vrot.slane %v112_v54, %v299_v45  ;;  %v266_v11 = vrot.slane %v110_v46, %v265_v48 }
  0xee   :  { %v261_v12 = vadd.f32 %v259_v62, %v249_v4  ;;  %v260_v13 = vmul.f32 %v258_v5, %v220_v43  ;;  %v284_v14 = vmul.f32 %v282_v6, %v208_v33  ;;  %v294_v15 = vmul.f32 %v292_v7, %v214_v36 }
  0xef   :  { %v307_v16 = vadd.f32 %v305_v1, %v295_v8  ;;  %v306_v17 = vmul.f32 %v304_v10, %v220_v43  ;;  %v271_v18 = vmul.f32 %v266_v11, %v224_v47  ;;  %v312_v19 = vrot.slane %v110_v46, %v311_v49 }
  0xf0   :  { %v262_v20 = vadd.f32 %v260_v13, %v250_v9  ;;  %v296_v21 = vadd.f32 %v294_v15, %v284_v14  ;;  %v270_v22 = vrot.slane %v112_v54, %v265_v48  ;;  %v316_v23 = vrot.slane %v112_v54, %v311_v49  ;;  %v354_v49 = vld [vmem:[%s541_s3] sm:$0xff] }
  0xf1   :  { %v317_v24 = vmul.f32 %v312_v19, %v224_v47  ;;  %v273_v25 = vadd.f32 %v271_v18, %v261_v12  ;;  %v411_v48 = vmov 0  }
  0xf2   :  { %v308_v26 = vadd.f32 %v306_v17, %v296_v21  ;;  %v272_v27 = vmul.f32 %v270_v22, %v226_v55  ;;  %v318_v28 = vmul.f32 %v316_v23, %v226_v55  ;;  %405 = vset.pattern.permute.xlu0 %v411_v48  ;;  %406 = vset.pattern.permute.xlu1 %v411_v48  ;;  %v345_v55 = vld [vmem:[%s542_s2] sm:$0xff] }
  0xf3   :  { %v319_v29 = vadd.f32 %v317_v24, %v307_v16 }
  0xf4   :  { %v320_v30 = vadd.f32 %v318_v28, %v308_v26  ;;  %v274_v31 = vadd.f32 %v272_v27, %v262_v20 }
  0xf6   :  { %v321_v32 = vadd.f32 %v274_v31, %v273_v25  ;;  %v324_v33 = vadd.f32 %v320_v30, %v319_v29 }
  0xf8   :  { %322 = vadd.xlane.f32.xlu0 %v321_v32 }
  0xfc   :  { %325 = vadd.xlane.f32.xlu0 %v324_v33 }
 0x185   :  { %v323_v34 = vpop.xlane.xlu0 %322 }
 0x189   :  { %v326_v35 = vpop.xlane.xlu0 %325 }
 0x18a   :  { %v327_v36 = vadd.f32 %v326_v35, %v323_v34 }
 0x18c   :  { %v328_v37 = vmul.f32 0.001953125, %v327_v36 }
 0x18e   :  { %v329_v38 = vsub.f32 %v273_v25, %v328_v37  ;;  %v330_v39 = vsub.f32 %v274_v31, %v328_v37  ;;  %v331_v40 = vsub.f32 %v319_v29, %v328_v37  ;;  %v332_v41 = vsub.f32 %v320_v30, %v328_v37 }
 0x190   :  { %v333_v42 = vmul.f32 %v329_v38, %v329_v38  ;;  %v334_v43 = vmul.f32 %v330_v39, %v330_v39  ;;  %v338_v45 = vmul.f32 %v331_v40, %v331_v40  ;;  %v339_v46 = vmul.f32 %v332_v41, %v332_v41 }
 0x192   :  { %v335_v44 = vadd.f32 %v334_v43, %v333_v42  ;;  %v340_v47 = vadd.f32 %v339_v46, %v338_v45 }
 0x194   :  { %336 = vadd.xlane.f32.xlu1 %v335_v44 }
 0x198   :  { %341 = vadd.xlane.f32.xlu1 %v340_v47 }
 0x1a9   :  { %357 = vperm.xlu1 %406, %v354_v49  }
 0x221   :  { %v337_v50 = vpop.xlane.xlu1 %336 }
 0x225   :  { %v342_v51 = vpop.xlane.xlu1 %341 }
 0x226   :  { %v343_v52 = vadd.f32 %v342_v51, %v337_v50 }
 0x228   :  { %v344_v53 = vmul.f32 0.001953125, %v343_v52 }
 0x229   :  { %v358_v59 = vpop.permute.xlu1 %357 }
 0x22a   :  { %v346_v54 = vadd.f32 1e-05, %v344_v53 }
 0x22c   :  { %408 = vrsqrt.f32 %v346_v54 }
 0x236   :  { %v409_v56 = vpop.eup %408 }
 0x237   :  { %v348_v57 = vmul.f32 %v409_v56, %v345_v55 }
 0x239   :  { %351 = vperm.xlu0 %405, %v348_v57  }
 0x2b8   :  { %v352_v58 = vpop.permute.xlu0 %351 }
 0x2b9   :  { %v360_v60 = vmul.f32 %v352_v58, %v329_v38  ;;  %v361_v61 = vmul.f32 %v352_v58, %v330_v39  ;;  %v368_v62 = vmul.f32 %v352_v58, %v331_v40  ;;  %v369_v63 = vmul.f32 %v352_v58, %v332_v41 }
 0x2bb   :  { %v362_v0 = vadd.f32 %v360_v60, %v358_v59  ;;  %v363_v1 = vadd.f32 %v361_v61, %v358_v59  ;;  %v370_v2 = vadd.f32 %v368_v62, %v358_v59  ;;  %v371_v3 = vadd.f32 %v369_v63, %v358_v59 }
 0x2bd   :  { %v364_v4 = vmax.f32 %v362_v0, 0.0  ;;  %v365_v5 = vmax.f32 %v363_v1, 0.0  ;;  %v372_v6 = vmax.f32 %v370_v2, 0.0  ;;  %v373_v7 = vmax.f32 %v371_v3, 0.0 }
 0x2bf   :  { %366 = vst [vmem:[%s543_s6] sm:$0xff] %v364_v4  ;;  %367 = vst [vmem:[%s543_s6 + $0x8] sm:$0xff] %v365_v5 }
 0x2c0   :  { %374 = vst [vmem:[%s543_s6 + $0x10] sm:$0xff] %v372_v6  ;;  %375 = vst [vmem:[%s543_s6 + $0x18] sm:$0xff] %v373_v7 }

</bundles_post_ra>
